<compile_context>
chip_gen: v7x
topology: tpu7x:2x2x1
jax: 0.10.0
libtpu: 0.0.40
codegen_flags: <defaults>
</compile_context>

<pallas_src>
import functools

import jax
import jax.numpy as jnp
from jax.experimental import pallas as pl
from jax.experimental.pallas import tpu as pltpu


def _round_up(x, m):
    return (x + m - 1) // m * m


def _grn_kernel(xc_ref, w_all_ref, b_all_ref, w2_ref, b2_ref, gamma_ref, beta_ref,
                o_ref, *, c_out, c_pad):
    """One row tile of the fused gated-residual block.

    xc_ref    : (TM, K_pad)        im2col'd input rows (+ raw x cols for the residual)
    w_all_ref : (K_pad, 3*C_pad)   fused [conv1_a | conv1_b | residual] weight
    b_all_ref : (1, 3*C_pad)
    w2_ref    : (C_pad, C_pad)     1x1 conv2 (zero padded)
    b2_ref, gamma_ref, beta_ref : (1, C_pad)
    o_ref     : (TM, C_pad)        lane-dense output tile
    """
    xc = xc_ref[...]

    # conv1 (both gate halves) + residual 1x1 conv in a single MXU matmul.
    acc = jnp.dot(xc, w_all_ref[...], preferred_element_type=jnp.float32) + b_all_ref[...]
    x_a = acc[:, :c_pad]                       # lane-aligned (multiple-of-128) splits
    x_b = acc[:, c_pad:2 * c_pad]
    residual = acc[:, 2 * c_pad:]

    gated = jnp.tanh(x_a) * jax.nn.sigmoid(x_b)        # padded lanes stay exactly 0

    # conv2: 1x1 conv == channel matmul; dropout(p=0.1) is identity in eval mode.
    y = jnp.dot(gated, w2_ref[...], preferred_element_type=jnp.float32) + b2_ref[...]
    y = y + residual                                    # padded lanes of y are exactly 0

    # LayerNorm over the real C_out channels (eps = 1e-5, PyTorch default).
    inv_c = 1.0 / c_out
    mean = jnp.sum(y, axis=-1, keepdims=True) * inv_c   # padded lanes contribute 0
    mask = jax.lax.broadcasted_iota(jnp.int32, y.shape, 1) < c_out
    diff = jnp.where(mask, y - mean, 0.0)
    var = jnp.sum(diff * diff, axis=-1, keepdims=True) * inv_c
    y_n = diff * jax.lax.rsqrt(var + 1e-5)
    o_ref[...] = (y_n * gamma_ref[...] + beta_ref[...]).astype(o_ref.dtype)


def gated_residual_network(x, params, *, kernel_size, dilation):
    """x: (B, C_in, L) float32 (PyTorch NCL layout). Returns (B, C_out, L)."""
    w1, b1, w2, b2, wr, br, gamma, beta = params
    B, C_in, L = x.shape
    C_out = w2.shape[-1]
    total_pad = dilation * (kernel_size - 1)
    # PyTorch padding='same' (stride 1) is symmetric only when this is even.
    assert total_pad % 2 == 0, "asymmetric 'same' padding not supported"
    pad = total_pad // 2

    # --- im2col unfold (channels-last) so conv1 + residual become one matmul ----------
    x_cl = jnp.transpose(x, (0, 2, 1))                          # (B, L, C_in)
    xp = jnp.pad(x_cl, ((0, 0), (pad, pad), (0, 0)))            # (B, L + 2*pad, C_in)
    taps = [xp[:, t * dilation:t * dilation + L, :] for t in range(kernel_size)]
    x_cat = jnp.concatenate(taps + [x_cl], axis=-1)             # (B, L, (k+1)*C_in)
    K = (kernel_size + 1) * C_in
    rows = B * L
    x_cat = x_cat.reshape(rows, K)

    # --- pad channels / rows for lane-dense (multiple-of-128) tiles --------------------
    C_pad = _round_up(C_out, 128)
    K_pad = _round_up(K, 128)
    TM = min(512, _round_up(rows, 8))            # row tile: sublane aligned, VMEM-friendly
    rows_pad = _round_up(rows, TM)
    x_cat = jnp.pad(x_cat, ((0, rows_pad - rows), (0, K_pad - K)))

    # --- fused weight [conv1_a | conv1_b | residual] (zero padded) ---------------------
    kc = kernel_size * C_in
    w1_a = w1[:, :, :C_out].reshape(kc, C_out)
    w1_b = w1[:, :, C_out:].reshape(kc, C_out)
    W_all = jnp.zeros((K_pad, 3 * C_pad), jnp.float32)
    W_all = W_all.at[:kc, :C_out].set(w1_a)
    W_all = W_all.at[:kc, C_pad:C_pad + C_out].set(w1_b)
    W_all = W_all.at[kc:kc + C_in, 2 * C_pad:2 * C_pad + C_out].set(wr)

    b_all = jnp.zeros((1, 3 * C_pad), jnp.float32)
    b_all = b_all.at[0, :C_out].set(b1[0, :C_out])
    b_all = b_all.at[0, C_pad:C_pad + C_out].set(b1[0, C_out:])
    b_all = b_all.at[0, 2 * C_pad:2 * C_pad + C_out].set(br[0])

    W2p = jnp.zeros((C_pad, C_pad), jnp.float32).at[:C_out, :C_out].set(w2)
    b2p = jnp.zeros((1, C_pad), jnp.float32).at[0, :C_out].set(b2[0])
    gammap = jnp.zeros((1, C_pad), jnp.float32).at[0, :C_out].set(gamma[0])
    betap = jnp.zeros((1, C_pad), jnp.float32).at[0, :C_out].set(beta[0])

    kernel = functools.partial(_grn_kernel, c_out=C_out, c_pad=C_pad)

    flops = 2 * rows_pad * K_pad * 3 * C_pad + 2 * rows_pad * C_pad * C_pad
    transcendentals = 3 * rows_pad * C_pad + rows_pad
    bytes_accessed = 4 * (rows_pad * K_pad + K_pad * 3 * C_pad + C_pad * C_pad
                          + 6 * C_pad + rows_pad * C_pad)

    out = pl.pallas_call(
        kernel,
        out_shape=jax.ShapeDtypeStruct((rows_pad, C_pad), x.dtype),
        grid=(rows_pad // TM,),
        in_specs=[
            pl.BlockSpec((TM, K_pad), lambda i: (i, 0)),
            pl.BlockSpec((K_pad, 3 * C_pad), lambda i: (0, 0)),
            pl.BlockSpec((1, 3 * C_pad), lambda i: (0, 0)),
            pl.BlockSpec((C_pad, C_pad), lambda i: (0, 0)),
            pl.BlockSpec((1, C_pad), lambda i: (0, 0)),
            pl.BlockSpec((1, C_pad), lambda i: (0, 0)),
            pl.BlockSpec((1, C_pad), lambda i: (0, 0)),
        ],
        out_specs=pl.BlockSpec((TM, C_pad), lambda i: (i, 0)),
        compiler_params=pltpu.CompilerParams(dimension_semantics=("parallel",)),
        cost_estimate=pl.CostEstimate(flops=flops, transcendentals=transcendentals,
                                      bytes_accessed=bytes_accessed),
    )(x_cat, W_all, b_all, W2p, b2p, gammap, betap)

    out = out[:rows, :C_out].reshape(B, L, C_out)
    return jnp.transpose(out, (0, 2, 1))                        # back to (B, C_out, L)


def make_params(key, c_in, c_out, kernel_size):
    """Deterministic synthetic parameters (shapes follow the PyTorch module)."""
    k1, k2, k3, k4, k5, k6 = jax.random.split(key, 6)
    scale = 0.1
    w1 = scale * jax.random.normal(k1, (kernel_size, c_in, 2 * c_out), jnp.float32)
    b1 = scale * jax.random.normal(k2, (1, 2 * c_out), jnp.float32)
    w2 = scale * jax.random.normal(k3, (c_out, c_out), jnp.float32)
    b2 = scale * jax.random.normal(k4, (1, c_out), jnp.float32)
    if c_in != c_out:
        wr = scale * jax.random.normal(k5, (c_in, c_out), jnp.float32)
        br = scale * jax.random.normal(k6, (1, c_out), jnp.float32)
    else:
        # nn.Identity() residual: identity channel matmul (folded into the fused weight).
        wr = jnp.eye(c_in, dtype=jnp.float32)
        br = jnp.zeros((1, c_out), jnp.float32)
    gamma = jnp.ones((1, c_out), jnp.float32)                   # LayerNorm default init
    beta = jnp.zeros((1, c_out), jnp.float32)
    return (w1, b1, w2, b2, wr, br, gamma, beta)


def ref_forward(x, params, *, kernel_size, dilation):
    """Pure-JAX reference via lax.conv_general_dilated (mirrors the PyTorch forward)."""
    w1, b1, w2, b2, wr, br, gamma, beta = params
    C_out = w2.shape[-1]
    pad = dilation * (kernel_size - 1) // 2
    dn = ('NCH', 'OIH', 'NCH')

    w1_oik = jnp.transpose(w1, (2, 1, 0))                       # (2*C_out, C_in, k)
    h = jax.lax.conv_general_dilated(x, w1_oik, (1,), [(pad, pad)],
                                     rhs_dilation=(dilation,), dimension_numbers=dn)
    h = h + b1.reshape(1, -1, 1)
    x_a, x_b = h[:, :C_out], h[:, C_out:]
    g = jnp.tanh(x_a) * jax.nn.sigmoid(x_b)

    w2_oik = jnp.transpose(w2, (1, 0))[:, :, None]
    y = jax.lax.conv_general_dilated(g, w2_oik, (1,), [(0, 0)], dimension_numbers=dn)
    y = y + b2.reshape(1, -1, 1)

    wr_oik = jnp.transpose(wr, (1, 0))[:, :, None]
    res = jax.lax.conv_general_dilated(x, wr_oik, (1,), [(0, 0)], dimension_numbers=dn)
    res = res + br.reshape(1, -1, 1)

    y = y + res
    yt = jnp.transpose(y, (0, 2, 1))
    mean = jnp.mean(yt, -1, keepdims=True)
    var = jnp.mean((yt - mean) ** 2, -1, keepdims=True)
    yt = (yt - mean) / jnp.sqrt(var + 1e-5)
    yt = yt * gamma.reshape(1, 1, -1) + beta.reshape(1, 1, -1)
    return jnp.transpose(yt, (0, 2, 1))


if __name__ == "__main__":
    B, C_in, C_out, L = 2, 4, 32, 16
    kernel_size = 3
    dilation = 2

    key = jax.random.PRNGKey(0)
    kx, kp = jax.random.split(key)
    x = jax.random.normal(kx, (B, C_in, L), jnp.float32)        # NCL, like PyTorch Conv1d input
    params = make_params(kp, C_in, C_out, kernel_size)

    out = gated_residual_network(x, params, kernel_size=kernel_size, dilation=dilation)
    out = jax.block_until_ready(out)

    ref = jax.block_until_ready(ref_forward(x, params, kernel_size=kernel_size,
                                            dilation=dilation))
    assert out.shape == (B, C_out, L)
    assert jnp.allclose(out, ref, atol=1e-4, rtol=1e-4), "Pallas kernel mismatch vs reference"
    print("KERNEL_OK")
</pallas_src>

<mosaic_0001>
module attributes {stable_mosaic.version = 11 : i64} {
  func.func @_grn_kernel(%arg0: i32, %arg1: memref<32x128xf32, #tpu.memory_space<vmem>>, %arg2: memref<128x384xf32, #tpu.memory_space<vmem>>, %arg3: memref<1x384xf32, #tpu.memory_space<vmem>>, %arg4: memref<128x128xf32, #tpu.memory_space<vmem>>, %arg5: memref<1x128xf32, #tpu.memory_space<vmem>>, %arg6: memref<1x128xf32, #tpu.memory_space<vmem>>, %arg7: memref<1x128xf32, #tpu.memory_space<vmem>>, %arg8: memref<32x128xf32, #tpu.memory_space<vmem>>) attributes {dimension_semantics = [#tpu.dimension_semantics<parallel>], iteration_bounds = array<i64: 1>, scalar_prefetch = 0 : i64, scratch_operands = 0 : i64, tpu.core_type = #tpu.core_type<tc>, window_params = [{transform_indices = @transform_0, window_bounds = array<i64: 32, 128>}, {pipeline_mode = #tpu.pipeline_mode<synchronous>, transform_indices = @transform_1, window_bounds = array<i64: 128, 384>}, {pipeline_mode = #tpu.pipeline_mode<synchronous>, transform_indices = @transform_2, window_bounds = array<i64: 1, 384>}, {pipeline_mode = #tpu.pipeline_mode<synchronous>, transform_indices = @transform_3, window_bounds = array<i64: 128, 128>}, {pipeline_mode = #tpu.pipeline_mode<synchronous>, transform_indices = @transform_4, window_bounds = array<i64: 1, 128>}, {pipeline_mode = #tpu.pipeline_mode<synchronous>, transform_indices = @transform_5, window_bounds = array<i64: 1, 128>}, {pipeline_mode = #tpu.pipeline_mode<synchronous>, transform_indices = @transform_6, window_bounds = array<i64: 1, 128>}, {transform_indices = @transform_7, window_bounds = array<i64: 32, 128>}]} {
    %c0 = arith.constant 0 : index
    %c0_0 = arith.constant 0 : index
    %0 = vector.load %arg1[%c0, %c0_0] : memref<32x128xf32, #tpu.memory_space<vmem>>, vector<32x128xf32>
    %c0_1 = arith.constant 0 : index
    %c0_2 = arith.constant 0 : index
    %1 = vector.load %arg2[%c0_1, %c0_2] : memref<128x384xf32, #tpu.memory_space<vmem>>, vector<128x384xf32>
    %cst = arith.constant dense<0.000000e+00> : vector<32x384xf32>
    %2 = tpu.matmul %0, %1, %cst {dimension_numbers = #tpu.dot_dimension_numbers<[1], [0], [0], [1], [0, 0, 1, 1], [], []>} : vector<32x128xf32>, vector<128x384xf32>, vector<32x384xf32> -> vector<32x384xf32>
    %c0_3 = arith.constant 0 : index
    %c0_4 = arith.constant 0 : index
    %3 = vector.load %arg3[%c0_3, %c0_4] : memref<1x384xf32, #tpu.memory_space<vmem>>, vector<1x384xf32>
    %4 = vector.broadcast %3 : vector<1x384xf32> to vector<32x384xf32>
    %5 = arith.addf %2, %4 : vector<32x384xf32>
    %6 = vector.extract_strided_slice %5 {offsets = [0, 0], sizes = [32, 128], strides = [1, 1]} : vector<32x384xf32> to vector<32x128xf32>
    %7 = vector.extract_strided_slice %5 {offsets = [0, 128], sizes = [32, 128], strides = [1, 1]} : vector<32x384xf32> to vector<32x128xf32>
    %8 = vector.extract_strided_slice %5 {offsets = [0, 256], sizes = [32, 128], strides = [1, 1]} : vector<32x384xf32> to vector<32x128xf32>
    %9 = math.tanh %6 : vector<32x128xf32>
    %10 = arith.negf %7 : vector<32x128xf32>
    %11 = math.exp %10 : vector<32x128xf32>
    %cst_5 = arith.constant 1.000000e+00 : f32
    %12 = vector.broadcast %cst_5 : f32 to vector<32x128xf32>
    %13 = arith.addf %12, %11 : vector<32x128xf32>
    %14 = arith.divf %12, %13 : vector<32x128xf32>
    %15 = arith.mulf %9, %14 : vector<32x128xf32>
    %c0_6 = arith.constant 0 : index
    %c0_7 = arith.constant 0 : index
    %16 = vector.load %arg4[%c0_6, %c0_7] : memref<128x128xf32, #tpu.memory_space<vmem>>, vector<128x128xf32>
    %cst_8 = arith.constant dense<0.000000e+00> : vector<32x128xf32>
    %17 = tpu.matmul %15, %16, %cst_8 {dimension_numbers = #tpu.dot_dimension_numbers<[1], [0], [0], [1], [0, 0, 1, 1], [], []>} : vector<32x128xf32>, vector<128x128xf32>, vector<32x128xf32> -> vector<32x128xf32>
    %c0_9 = arith.constant 0 : index
    %c0_10 = arith.constant 0 : index
    %18 = vector.load %arg5[%c0_9, %c0_10] : memref<1x128xf32, #tpu.memory_space<vmem>>, vector<1x128xf32>
    %19 = vector.broadcast %18 : vector<1x128xf32> to vector<32x128xf32>
    %20 = arith.addf %17, %19 : vector<32x128xf32>
    %21 = arith.addf %20, %8 : vector<32x128xf32>
    %cst_11 = arith.constant dense<0.000000e+00> : vector<32xf32>
    %22 = vector.multi_reduction <add>, %21, %cst_11 [1] : vector<32x128xf32> to vector<32xf32>
    %23 = vector.shape_cast %22 : vector<32xf32> to vector<32x1xf32>
    %cst_12 = arith.constant 3.125000e-02 : f32
    %24 = vector.broadcast %cst_12 : f32 to vector<32x1xf32>
    %25 = arith.mulf %23, %24 : vector<32x1xf32>
    %26 = tpu.iota {dimensions = array<i32: 1>} : vector<32x128xi32>
    %c32_i32 = arith.constant 32 : i32
    %27 = vector.broadcast %c32_i32 : i32 to vector<32x128xi32>
    %28 = arith.cmpi slt, %26, %27 : vector<32x128xi32>
    %29 = vector.broadcast %25 : vector<32x1xf32> to vector<32x128xf32>
    %30 = arith.subf %21, %29 : vector<32x128xf32>
    %cst_13 = arith.constant 0.000000e+00 : f32
    %31 = vector.broadcast %cst_13 : f32 to vector<32x128xf32>
    %32 = arith.select %28, %30, %31 : vector<32x128xi1>, vector<32x128xf32>
    %33 = arith.mulf %32, %32 : vector<32x128xf32>
    %cst_14 = arith.constant dense<0.000000e+00> : vector<32xf32>
    %34 = vector.multi_reduction <add>, %33, %cst_14 [1] : vector<32x128xf32> to vector<32xf32>
    %35 = vector.shape_cast %34 : vector<32xf32> to vector<32x1xf32>
    %cst_15 = arith.constant 3.125000e-02 : f32
    %36 = vector.broadcast %cst_15 : f32 to vector<32x1xf32>
    %37 = arith.mulf %35, %36 : vector<32x1xf32>
    %cst_16 = arith.constant 9.99999974E-6 : f32
    %38 = vector.broadcast %cst_16 : f32 to vector<32x1xf32>
    %39 = arith.addf %37, %38 : vector<32x1xf32>
    %40 = math.rsqrt %39 : vector<32x1xf32>
    %41 = vector.broadcast %40 : vector<32x1xf32> to vector<32x128xf32>
    %42 = arith.mulf %32, %41 : vector<32x128xf32>
    %c0_17 = arith.constant 0 : index
    %c0_18 = arith.constant 0 : index
    %43 = vector.load %arg6[%c0_17, %c0_18] : memref<1x128xf32, #tpu.memory_space<vmem>>, vector<1x128xf32>
    %44 = vector.broadcast %43 : vector<1x128xf32> to vector<32x128xf32>
    %45 = arith.mulf %42, %44 : vector<32x128xf32>
    %c0_19 = arith.constant 0 : index
    %c0_20 = arith.constant 0 : index
    %46 = vector.load %arg7[%c0_19, %c0_20] : memref<1x128xf32, #tpu.memory_space<vmem>>, vector<1x128xf32>
    %47 = vector.broadcast %46 : vector<1x128xf32> to vector<32x128xf32>
    %48 = arith.addf %45, %47 : vector<32x128xf32>
    %c0_21 = arith.constant 0 : index
    %c0_22 = arith.constant 0 : index
    %49 = vector.load %arg8[%c0_21, %c0_22] : memref<32x128xf32, #tpu.memory_space<vmem>>, vector<32x128xf32>
    tpu.vector_store %arg8[%c0_21, %c0_22], %48 {strides = array<i32>} : memref<32x128xf32, #tpu.memory_space<vmem>>, vector<32x128xf32>,
    return
  }
  func.func @transform_0(%arg0: i32) -> (i32, i32) {
    %c0_i32 = arith.constant 0 : i32
    %c0_i32_0 = arith.constant 0 : i32
    return %arg0, %c0_i32 : i32, i32
  }
  func.func @transform_1(%arg0: i32) -> (i32, i32) {
    %c0_i32 = arith.constant 0 : i32
    %c0_i32_0 = arith.constant 0 : i32
    %c0_i32_1 = arith.constant 0 : i32
    return %c0_i32, %c0_i32_0 : i32, i32
  }
  func.func @transform_2(%arg0: i32) -> (i32, i32) {
    %c0_i32 = arith.constant 0 : i32
    %c0_i32_0 = arith.constant 0 : i32
    %c0_i32_1 = arith.constant 0 : i32
    return %c0_i32, %c0_i32_0 : i32, i32
  }
  func.func @transform_3(%arg0: i32) -> (i32, i32) {
    %c0_i32 = arith.constant 0 : i32
    %c0_i32_0 = arith.constant 0 : i32
    %c0_i32_1 = arith.constant 0 : i32
    return %c0_i32, %c0_i32_0 : i32, i32
  }
  func.func @transform_4(%arg0: i32) -> (i32, i32) {
    %c0_i32 = arith.constant 0 : i32
    %c0_i32_0 = arith.constant 0 : i32
    %c0_i32_1 = arith.constant 0 : i32
    return %c0_i32, %c0_i32_0 : i32, i32
  }
  func.func @transform_5(%arg0: i32) -> (i32, i32) {
    %c0_i32 = arith.constant 0 : i32
    %c0_i32_0 = arith.constant 0 : i32
    %c0_i32_1 = arith.constant 0 : i32
    return %c0_i32, %c0_i32_0 : i32, i32
  }
  func.func @transform_6(%arg0: i32) -> (i32, i32) {
    %c0_i32 = arith.constant 0 : i32
    %c0_i32_0 = arith.constant 0 : i32
    %c0_i32_1 = arith.constant 0 : i32
    return %c0_i32, %c0_i32_0 : i32, i32
  }
  func.func @transform_7(%arg0: i32) -> (i32, i32) {
    %c0_i32 = arith.constant 0 : i32
    %c0_i32_0 = arith.constant 0 : i32
    return %arg0, %c0_i32 : i32, i32
  }
}

</mosaic_0001>

<bundles_post_ra>
// kernel: tpu_custom_call.1
= control target key start
LH: loop header
LB: loop body
LE: loop exit
PB: predicated region body
PF: predicated region fallthrough
CT: control target
= control target key end

     0   :  { %12 = vsyncpa [#allocation3], 0  ;;  %s1070_s0 = inlined_call_operand.hbm [shape: f32[32,128], index: 0, kind: input, shape index: {}]   ;;  %s1071_s1 = inlined_call_operand.hbm [shape: f32[128,384], index: 1, kind: input, shape index: {}]   ;;  %s1072_s2 = inlined_call_operand.vmem [shape: f32[1,384], index: 2, kind: input, shape index: {}]   ;;  %s1073_s3 = inlined_call_operand.hbm [shape: f32[128,128], index: 3, kind: input, shape index: {}]   ;;  %s1074_s4 = inlined_call_operand.vmem [shape: f32[1,128], index: 4, kind: input, shape index: {}]   ;;  %s1075_s5 = inlined_call_operand.vmem [shape: f32[1,128], index: 5, kind: input, shape index: {}]   ;;  %s1076_s6 = inlined_call_operand.vmem [shape: f32[1,128], index: 6, kind: input, shape index: {}]   ;;  %s1077_s7 = inlined_call_operand.hbm [shape: f32[32,128], index: 7, kind: output, shape index: {}]  }
   0x1   :  { %13 = vsyncpa [#allocation6], 0 }
   0x2   :  { %14 = vsyncpa [#allocation4], 0  ;;  %s932_s24 = smov [#allocation5]   ;;  %s838_s28 = scalar_lea.hbm %s1071_s1, 6144 }
   0x3   :  { %s32_s25 = sshll.u32 %s932_s24, 4  ;;  %p839_p0 = scmp.ne.s32.totalorder %s1071_s1, %s838_s28  ;;  %s33_s25 = int_to_ptr.vmem [resolvable:$true] %s32_s25 }
   0x4   :  { %p842_p1 = scmp.lt.u32.totalorder %s838_s28, %s1071_s1 }
   0x6   :  { %p844_p2 = pnand %p842_p1, %p839_p0 }
   0x8   :  { %847 = shalt.err (!%p844_p2)
}
   0x9   :  { %s848_s10 = scalar_lea.vmem %s33_s25, 6144  ;;  %p853_p4 = scmp.lt.s32.totalorder %s33_s25, %s33_s25 }
   0xa   :  { %p849_p3 = scmp.ne.s32.totalorder %s33_s25, %s848_s10  ;;  %p854_p5 = scmp.lt.s32.totalorder %s848_s10, %s848_s10 }
   0xc   :  { %p855_p6 = por %p854_p5, %p853_p4 }
   0xe   :  { %p856_p7 = pnand %p855_p6, %p849_p3 }
  0x10   :  { %859 = shalt.err (!%p856_p7)
}
  0x11   :  { %s933_s11 = smov 384   ;;  %s934_s12 = smov 24  }
  0x12   :  { %38 = dma.hbm_to_vmem [thread:$0]  %s1071_s1, 6144, %s33_s25, [#allocation6], %s933_s11, %s933_s11, %s934_s12  }
  0x13   :  { %s935_s15 = smov [#allocation2]   ;;  %s860_s19 = scalar_lea.hbm %s1070_s0, 512 }
  0x14   :  { %s20_s16 = sshll.u32 %s935_s15, 4  ;;  %p861_p8 = scmp.ne.s32.totalorder %s1070_s0, %s860_s19  ;;  %s21_s16 = int_to_ptr.vmem [resolvable:$true] %s20_s16 }
  0x15   :  { %p864_p9 = scmp.lt.u32.totalorder %s860_s19, %s1070_s0 }
  0x17   :  { %p866_p10 = pnand %p864_p9, %p861_p8 }
  0x19   :  { %869 = shalt.err (!%p866_p10)
}
  0x1a   :  { %s870_s24 = scalar_lea.vmem %s21_s16, 512  ;;  %p875_p12 = scmp.lt.s32.totalorder %s21_s16, %s21_s16 }
  0x1b   :  { %p871_p11 = scmp.ne.s32.totalorder %s21_s16, %s870_s24  ;;  %p876_p13 = scmp.lt.s32.totalorder %s870_s24, %s870_s24 }
  0x1d   :  { %p877_p0 = por %p876_p13, %p875_p12 }
  0x1f   :  { %p878_p1 = pnand %p877_p0, %p871_p11 }
  0x21   :  { %881 = shalt.err (!%p878_p1)
}
  0x22   :  { %s936_s1 = smov 128   ;;  %s937_s25 = smov 8  }
  0x23   :  { %26 = dma.hbm_to_vmem [thread:$0]  %s1070_s0, 512, %s21_s16, [#allocation3], %s936_s1, %s936_s1, %s937_s25  }
  0x24   :  { %s938_s28 = smov [#allocation7]   ;;  %s882_s9 = scalar_lea.hbm %s1073_s3, 2048 }
  0x25   :  { %s46_s29 = sshll.u32 %s938_s28, 4  ;;  %p883_p2 = scmp.ne.s32.totalorder %s1073_s3, %s882_s9  ;;  %s47_s29 = int_to_ptr.vmem [resolvable:$true] %s46_s29 }
  0x26   :  { %p886_p3 = scmp.lt.u32.totalorder %s882_s9, %s1073_s3 }
  0x28   :  { %p888_p4 = pnand %p886_p3, %p883_p2 }
  0x2a   :  { %891 = shalt.err (!%p888_p4)
}
  0x2b   :  { %s892_s14 = scalar_lea.vmem %s47_s29, 2048  ;;  %p897_p6 = scmp.lt.s32.totalorder %s47_s29, %s47_s29 }
  0x2c   :  { %p893_p5 = scmp.ne.s32.totalorder %s47_s29, %s892_s14  ;;  %p898_p7 = scmp.lt.s32.totalorder %s892_s14, %s892_s14 }
  0x2e   :  { %p899_p8 = por %p898_p7, %p897_p6 }
  0x30   :  { %p900_p9 = pnand %p899_p8, %p893_p5 }
  0x32   :  { %903 = shalt.err (!%p900_p9)
}
  0x33   :  { %52 = dma.hbm_to_vmem [thread:$0]  %s1073_s3, 2048, %s47_s29, [#allocation6], %s936_s1, %s936_s1, %s937_s25  }
  0x34   :  { %926 = dma.done.wait [#allocation3], 512  }
  0x35   :  { %927 = vsyncadd [#allocation3], 4294966784 }
  0x36   :  { %928 = dma.done.wait [#allocation6], 8192  }
  0x37   :  { %929 = vsyncadd [#allocation6], 4294959104  ;;  %v939_v0 = vmov 0.0   ;;  %v73_v1 = vld [vmem:[#allocation5 + $0x8] sm:$0xff]  ;;  %v76_v2 = vld [vmem:[#allocation5 + $0x20] sm:$0xff] }
  0x38   :  { %201 = vmatprep.mubr.f32.mxu0 %v939_v0  ;;  %v72_v3 = vld [vmem:[#allocation5] sm:$0xff]  ;;  %v673_v4 = vpack.c.bf16 %v76_v2, %v73_v1  ;;  %v75_v5 = vld [vmem:[#allocation5 + $0x18] sm:$0xff]  ;;  %v82_v7 = vld [vmem:[#allocation5 + $0x50] sm:$0xff] }
  0x39   :  { %v79_v6 = vld [vmem:[#allocation5 + $0x38] sm:$0xff]  ;;  %v675_v8 = vpack.c.bf16 %v75_v5, %v72_v3  ;;  %v78_v10 = vld [vmem:[#allocation5 + $0x30] sm:$0xff]  ;;  %v81_v11 = vld [vmem:[#allocation5 + $0x48] sm:$0xff] }
  0x3a   :  { %v677_v9 = vpack.c.bf16 %v82_v7, %v79_v6  ;;  %v85_v12 = vld [vmem:[#allocation5 + $0x68] sm:$0xff]  ;;  %674 = vmatprep.subr.bf16.mxu0 %v673_v4  ;;  %v88_v13 = vld [vmem:[#allocation5 + $0x80] sm:$0xff]  ;;  %v679_v14 = vpack.c.bf16 %v81_v11, %v78_v10  ;;  %v87_v17 = vld [vmem:[#allocation5 + $0x78] sm:$0xff] }
  0x3b   :  { %676 = vmatpush1.bf16.msra.mxu0 %v675_v8  ;;  %v681_v15 = vpack.c.bf16 %v88_v13, %v85_v12  ;;  %v84_v16 = vld [vmem:[#allocation5 + $0x60] sm:$0xff]  ;;  %v91_v18 = vld [vmem:[#allocation5 + $0x98] sm:$0xff]  ;;  %v94_v19 = vld [vmem:[#allocation5 + $0xb0] sm:$0xff] }
  0x3c   :  { %678 = vmatprep.subr.bf16.mxu0 %v677_v9  ;;  %v683_v20 = vpack.c.bf16 %v87_v17, %v84_v16  ;;  %v685_v21 = vpack.c.bf16 %v94_v19, %v91_v18  ;;  %v90_v22 = vld [vmem:[#allocation5 + $0x90] sm:$0xff]  ;;  %v93_v23 = vld [vmem:[#allocation5 + $0xa8] sm:$0xff]  ;;  %v100_v25 = vld [vmem:[#allocation5 + $0xe0] sm:$0xff] }
  0x3d   :  { %v97_v24 = vld [vmem:[#allocation5 + $0xc8] sm:$0xff]  ;;  %v68_v26 = vld [vmem:[#allocation2] sm:$0xff]  ;;  %v687_v28 = vpack.c.bf16 %v93_v23, %v90_v22  ;;  %v74_v29 = vld [vmem:[#allocation5 + $0x10] sm:$0xff] }
  0x3e   :  { %v96_v27 = vld [vmem:[#allocation5 + $0xc0] sm:$0xff]  ;;  %629 = vmatprep.mubr.f32.mxu1 %v68_v26  ;;  %v77_v30 = vld [vmem:[#allocation5 + $0x28] sm:$0xff]  ;;  %v689_v32 = vpack.c.bf16 %v100_v25, %v97_v24  ;;  %v99_v33 = vld [vmem:[#allocation5 + $0xd8] sm:$0xff] }
  0x3f   :  { %680 = vmatpush1.bf16.msra.mxu0 %v679_v14  ;;  %v80_v31 = vld [vmem:[#allocation5 + $0x40] sm:$0xff]  ;;  %v103_v34 = vld [vmem:[#allocation5 + $0xf8] sm:$0xff]  ;;  %v705_v35 = vpack.c.bf16 %v77_v30, %v74_v29  ;;  %v106_v37 = vld [vmem:[#allocation5 + $0x110] sm:$0xff]  ;;  %v691_v41 = vpack.c.bf16 %v99_v33, %v96_v27 }
  0x40   :  { %682 = vmatprep.subr.bf16.mxu0 %v681_v15  ;;  %v83_v36 = vld [vmem:[#allocation5 + $0x58] sm:$0xff]  ;;  %v86_v39 = vld [vmem:[#allocation5 + $0x70] sm:$0xff]  ;;  %v89_v40 = vld [vmem:[#allocation5 + $0x88] sm:$0xff]  ;;  %v693_v42 = vpack.c.bf16 %v106_v37, %v103_v34  ;;  %v122_v37 = vlaneseq }
  0x41   :  { %v709_v38 = vpack.c.bf16 %v83_v36, %v80_v31  ;;  %706 = vmatprep.subr.bf16.mxu1 %v705_v35  ;;  %v102_v43 = vld [vmem:[#allocation5 + $0xf0] sm:$0xff]  ;;  %v105_v44 = vld [vmem:[#allocation5 + $0x108] sm:$0xff]  ;;  %v713_v46 = vpack.c.bf16 %v89_v40, %v86_v39  ;;  %v112_v47 = vld [vmem:[#allocation5 + $0x140] sm:$0xff] }
  0x42   :  { %708 = vmatpush3.bf16.msra.mxu1 %v705_v35  ;;  %v109_v45 = vld [vmem:[#allocation5 + $0x128] sm:$0xff]  ;;  %v92_v48 = vld [vmem:[#allocation5 + $0xa0] sm:$0xff]  ;;  %v95_v49 = vld [vmem:[#allocation5 + $0xb8] sm:$0xff]  ;;  %v695_v50 = vpack.c.bf16 %v105_v44, %v102_v43 }
  0x43   :  { %684 = vmatpush1.bf16.msra.mxu0 %v683_v20  ;;  %710 = vmatprep.subr.bf16.mxu1 %v709_v38  ;;  %v697_v51 = vpack.c.bf16 %v112_v47, %v109_v45  ;;  %v108_v52 = vld [vmem:[#allocation5 + $0x120] sm:$0xff]  ;;  %v111_v53 = vld [vmem:[#allocation5 + $0x138] sm:$0xff]  ;;  %v717_v55 = vpack.c.bf16 %v95_v49, %v92_v48  ;;  %v118_v56 = vld [vmem:[#allocation5 + $0x170] sm:$0xff] }
  0x44   :  { %686 = vmatprep.subr.bf16.mxu0 %v685_v21  ;;  %v115_v54 = vld [vmem:[#allocation5 + $0x158] sm:$0xff]  ;;  %v98_v57 = vld [vmem:[#allocation5 + $0xd0] sm:$0xff]  ;;  %v101_v58 = vld [vmem:[#allocation5 + $0xe8] sm:$0xff]  ;;  %v699_v59 = vpack.c.bf16 %v111_v53, %v108_v52 }
  0x45   :  { %v701_v60 = vpack.c.bf16 %v118_v56, %v115_v54  ;;  %v114_v61 = vld [vmem:[#allocation5 + $0x150] sm:$0xff]  ;;  %v117_v62 = vld [vmem:[#allocation5 + $0x168] sm:$0xff]  ;;  %v721_v63 = vpack.c.bf16 %v101_v58, %v98_v57  ;;  %v71_v4 = vld [vmem:[#allocation2 + $0x18] sm:$0xff] }
  0x46   :  { %712 = vmatpush3.bf16.msra.mxu1 %v709_v38  ;;  %v703_v1 = vpack.c.bf16 %v117_v62, %v114_v61  ;;  %v69_v2 = vld [vmem:[#allocation2 + $0x8] sm:$0xff]  ;;  %v70_v3 = vld [vmem:[#allocation2 + $0x10] sm:$0xff]  ;;  %v104_v5 = vld [vmem:[#allocation5 + $0x100] sm:$0xff]  ;;  %v1028_v38 = vshrl.u32 %v122_v37, 7 }
  0x47   :  { %688 = vmatpush1.bf16.msra.mxu0 %v687_v28  ;;  %714 = vmatprep.subr.bf16.mxu1 %v713_v46  ;;  %v107_v6 = vld [vmem:[#allocation5 + $0x118] sm:$0xff]  ;;  %v110_v8 = vld [vmem:[#allocation5 + $0x130] sm:$0xff]  ;;  %v113_v9 = vld [vmem:[#allocation5 + $0x148] sm:$0xff] }
  0x48   :  { %690 = vmatprep.subr.bf16.mxu0 %v689_v32  ;;  %v725_v7 = vpack.c.bf16 %v107_v6, %v104_v5  ;;  %v343_v10 = vld [vmem:[#allocation7] sm:$0xff]  ;;  %v729_v11 = vpack.c.bf16 %v113_v9, %v110_v8  ;;  %v344_v12 = vld [vmem:[#allocation7 + $0x8] sm:$0xff]  ;;  %v119_v15 = vld [vmem:[#allocation5 + $0x178] sm:$0xff]  ;;  %v128_v39 = vsub.s32 1, %v1028_v38  ;;  %v124_v47 = vsub.s32 0, %v1028_v38 }
  0x49   :  { %v737_v13 = vpack.c.bf16 %v344_v12, %v343_v10  ;;  %v116_v14 = vld [vmem:[#allocation5 + $0x160] sm:$0xff]  ;;  %v345_v16 = vld [vmem:[#allocation7 + $0x10] sm:$0xff]  ;;  %v346_v17 = vld [vmem:[#allocation7 + $0x18] sm:$0xff] }
  0x4a   :  { %716 = vmatpush3.bf16.msra.mxu1 %v713_v46  ;;  %v741_v18 = vpack.c.bf16 %v346_v17, %v345_v16  ;;  %v347_v19 = vld [vmem:[#allocation7 + $0x20] sm:$0xff]  ;;  %v348_v20 = vld [vmem:[#allocation7 + $0x28] sm:$0xff]  ;;  %v349_v22 = vld [vmem:[#allocation7 + $0x30] sm:$0xff] }
  0x4b   :  { %692 = vmatpush1.bf16.msra.mxu0 %v691_v41  ;;  %718 = vmatprep.subr.bf16.mxu1 %v717_v55  ;;  %v745_v21 = vpack.c.bf16 %v348_v20, %v347_v19  ;;  %v350_v23 = vld [vmem:[#allocation7 + $0x38] sm:$0xff]  ;;  %v351_v25 = vld [vmem:[#allocation7 + $0x40] sm:$0xff]  ;;  %v353_v28 = vld [vmem:[#allocation7 + $0x50] sm:$0xff] }
  0x4c   :  { %694 = vmatprep.subr.bf16.mxu0 %v693_v42  ;;  %v749_v24 = vpack.c.bf16 %v350_v23, %v349_v22  ;;  %v354_v29 = vld [vmem:[#allocation7 + $0x58] sm:$0xff]  ;;  %v355_v31 = vld [vmem:[#allocation7 + $0x60] sm:$0xff]  ;;  %v356_v32 = vld [vmem:[#allocation7 + $0x68] sm:$0xff]  ;;  %v132_v22 = vsub.s32 2, %v1028_v38 }
  0x4d   :  { %v757_v30 = vpack.c.bf16 %v354_v29, %v353_v28  ;;  %v761_v33 = vpack.c.bf16 %v356_v32, %v355_v31  ;;  %v357_v34 = vld [vmem:[#allocation7 + $0x70] sm:$0xff]  ;;  %v358_v35 = vld [vmem:[#allocation7 + $0x78] sm:$0xff]  ;;  %v1034_v40 = vld [vmem:[%s1072_s2] sm:$0x7] }
  0x4e   :  { %720 = vmatpush3.bf16.msra.mxu1 %v717_v55  ;;  %v765_v36 = vpack.c.bf16 %v358_v35, %v357_v34  ;;  %v129_v41 = vrot.slane %v1034_v40, %v128_v39  ;;  %v125_v52 = vrot.slane %v1034_v40, %v124_v47  ;;  %v133_v23 = vrot.slane %v1034_v40, %v132_v22  ;;  %v554_v29 = vld [vmem:[%s1074_s4] ss:$0 sm:$0xff] }
  0x4f   :  { %696 = vmatpush1.bf16.msra.mxu0 %v695_v50  ;;  %722 = vmatprep.subr.bf16.mxu1 %v721_v63  ;;  %v468_v39 = vand.u32 127, %v122_v37 }
  0x50   :  { %698 = vmatprep.subr.bf16.mxu0 %v697_v51  ;;  %v793_v32 = vadd.f32 %v554_v29, %v133_v23 }
  0x51   :  { %vm469_vm0 = vcmp.lt.s32.totalorder %v468_v39, 32 }
  0x52   :  { %724 = vmatpush3.bf16.msra.mxu1 %v721_v63 }
  0x53   :  { %700 = vmatpush1.bf16.msra.mxu0 %v699_v59  ;;  %726 = vmatprep.subr.bf16.mxu1 %v725_v7 }
  0x54   :  { %702 = vmatprep.subr.bf16.mxu0 %v701_v60 }
  0x56   :  { %728 = vmatpush3.bf16.msra.mxu1 %v725_v7 }
  0x57   :  { %704 = vmatpush1.bf16.msra.mxu0 %v703_v1  ;;  %730 = vmatprep.subr.bf16.mxu1 %v729_v11 }
  0x58   :  { %738 = vmatprep.subr.bf16.mxu0 %v737_v13 }
  0x5a   :  { %202 = vmatmul.mubr.f32.vlgmr.msra.gmra.mrb[0].mxu0 %v68_v26  ;;  %732 = vmatpush3.bf16.msra.mxu1 %v729_v11  ;;  %v352_v26 = vld [vmem:[#allocation7 + $0x48] sm:$0xff] }
  0x5b   :  { %207 = vmatprep.mubr.f32.mxu0 %v939_v0  ;;  %740 = vmatpush3.bf16.msra.mxu0 %v737_v13  ;;  %v753_v27 = vpack.c.bf16 %v352_v26, %v351_v25 }
  0x5c   :  { %742 = vmatprep.subr.bf16.mxu0 %v741_v18 }
  0x5e   :  { %208 = vmatmul.mubr.f32.gmra.mrb[2].mxu0 %v69_v2 }
  0x5f   :  { %213 = vmatprep.mubr.f32.mxu0 %v939_v0  ;;  %744 = vmatpush3.bf16.msra.mxu0 %v741_v18 }
  0x60   :  { %746 = vmatprep.subr.bf16.mxu0 %v745_v21 }
  0x62   :  { %214 = vmatmul.mubr.f32.gmra.mrb[4].mxu0 %v70_v3 }
  0x63   :  { %219 = vmatprep.mubr.f32.mxu0 %v939_v0  ;;  %v733_v0 = vpack.c.bf16 %v119_v15, %v116_v14  ;;  %748 = vmatpush3.bf16.msra.mxu0 %v745_v21 }
  0x64   :  { %750 = vmatprep.subr.bf16.mxu0 %v749_v24 }
  0x65   :  { %734 = vmatprep.subr.bf16.mxu1 %v733_v0 }
  0x66   :  { %220 = vmatmul.mubr.f32.gmra.mrb[6].mxu0 %v71_v4  ;;  %736 = vmatpush3.bf16.msra.mxu1 %v733_v0 }
  0x67   :  { %769 = vmatprep.subr.bf16.mxu1 %v737_v13  ;;  %752 = vmatpush3.bf16.msra.mxu0 %v749_v24 }
  0x68   :  { %754 = vmatprep.subr.bf16.mxu0 %v753_v27 }
  0x69   :  { %630 = vmatmul.mubr.f32.vlgmr.msra.gmra.mrb[0].mxu1 %v69_v2 }
  0x6a   :  { %777 = vmatpush3.bf16.msra.mxu1 %v737_v13  ;;  %632 = vmatprep.mubr.f32.mxu1 %v70_v3 }
  0x6b   :  { %770 = vmatprep.subr.bf16.mxu1 %v741_v18  ;;  %756 = vmatpush3.bf16.msra.mxu0 %v753_v27 }
  0x6c   :  { %758 = vmatprep.subr.bf16.mxu0 %v757_v30 }
  0x6d   :  { %633 = vmatmul.mubr.f32.gmra.mrb[2].mxu1 %v71_v4 }
  0x6e   :  { %778 = vmatpush3.bf16.msra.mxu1 %v741_v18 }
  0x6f   :  { %771 = vmatprep.subr.bf16.mxu1 %v745_v21  ;;  %760 = vmatpush3.bf16.msra.mxu0 %v757_v30 }
  0x70   :  { %762 = vmatprep.subr.bf16.mxu0 %v761_v33 }
  0x72   :  { %779 = vmatpush3.bf16.msra.mxu1 %v745_v21 }
  0x73   :  { %772 = vmatprep.subr.bf16.mxu1 %v749_v24  ;;  %764 = vmatpush3.bf16.msra.mxu0 %v761_v33 }
  0x74   :  { %766 = vmatprep.subr.bf16.mxu0 %v765_v36 }
  0x76   :  { %780 = vmatpush3.bf16.msra.mxu1 %v749_v24 }
  0x77   :  { %773 = vmatprep.subr.bf16.mxu1 %v753_v27  ;;  %768 = vmatpush3.bf16.msra.mxu0 %v765_v36 }
  0x7a   :  { %781 = vmatpush3.bf16.msra.mxu1 %v753_v27 }
  0x7b   :  { %774 = vmatprep.subr.bf16.mxu1 %v757_v30 }
  0x7e   :  { %782 = vmatpush3.bf16.msra.mxu1 %v757_v30 }
  0x7f   :  { %775 = vmatprep.subr.bf16.mxu1 %v761_v33 }
  0x82   :  { %783 = vmatpush3.bf16.msra.mxu1 %v761_v33 }
  0x83   :  { %776 = vmatprep.subr.bf16.mxu1 %v765_v36 }
  0x86   :  { %784 = vmatpush3.bf16.msra.mxu1 %v765_v36 }
 0x12d   :  { %v203_v42 = vpop.f32.mrb[0].mxu0 }
 0x12e   :  { %v205_v43 = vpop.f32.mrb[1].mxu0  ;;  %v204_v57 = vadd.f32 %v203_v42, %v125_v52 }
 0x12f   :  { %v206_v44 = vadd.f32 %v205_v43, %v129_v41 }
 0x131   :  { %v550_v45 = vmul.f32 -1.442695, %v206_v44  ;;  %v209_v46 = vpop.f32.mrb[2].mxu0 }
 0x132   :  { %v211_v48 = vpop.f32.mrb[3].mxu0  ;;  %v210_v63 = vadd.f32 %v209_v46, %v125_v52 }
 0x133   :  { %806 = vpow2.f32 %v550_v45  ;;  %v212_v49 = vadd.f32 %v211_v48, %v129_v41 }
 0x135   :  { %v551_v50 = vmul.f32 -1.442695, %v212_v49  ;;  %v215_v51 = vpop.f32.mrb[4].mxu0 }
 0x136   :  { %v217_v53 = vpop.f32.mrb[5].mxu0  ;;  %v216_v3 = vadd.f32 %v215_v51, %v125_v52 }
 0x137   :  { %808 = vpow2.f32 %v551_v50  ;;  %v218_v54 = vadd.f32 %v217_v53, %v129_v41 }
 0x139   :  { %v552_v55 = vmul.f32 -1.442695, %v218_v54  ;;  %v221_v56 = vpop.f32.mrb[6].mxu0 }
 0x13a   :  { %v223_v58 = vpop.f32.mrb[7].mxu0  ;;  %v222_v6 = vadd.f32 %v221_v56, %v125_v52 }
 0x13b   :  { %810 = vpow2.f32 %v552_v55  ;;  %v224_v59 = vadd.f32 %v223_v58, %v129_v41 }
 0x13c   :  { %812 = vtanh.f32 %v204_v57  ;;  %v631_v20 = vpop.f32.mrb[0].mxu1 }
 0x13d   :  { %v807_v60 = vpop.eup %806  ;;  %v553_v61 = vmul.f32 -1.442695, %v224_v59  ;;  %v292_v21 = vpop.f32.mrb[1].mxu1  ;;  %v298_v24 = vadd.f32 %v631_v20, %v133_v23 }
 0x13e   :  { %v327_v62 = vadd.f32 1.0, %v807_v60  ;;  %v293_v25 = vadd.f32 %v292_v21, %v133_v23 }
 0x13f   :  { %814 = vpow2.f32 %v553_v61 }
 0x140   :  { %816 = vrcp.f32 %v327_v62 }
 0x141   :  { %v809_v1 = vpop.eup %808  ;;  %818 = vtanh.f32 %v210_v63 }
 0x142   :  { %v328_v2 = vadd.f32 1.0, %v809_v1 }
 0x144   :  { %820 = vrcp.f32 %v328_v2 }
 0x145   :  { %v811_v4 = vpop.eup %810  ;;  %822 = vtanh.f32 %v216_v3 }
 0x146   :  { %v329_v5 = vadd.f32 1.0, %v811_v4  ;;  %v813_v7 = vpop.eup %812 }
 0x148   :  { %824 = vrcp.f32 %v329_v5 }
 0x149   :  { %v815_v8 = vpop.eup %814  ;;  %826 = vtanh.f32 %v222_v6 }
 0x14a   :  { %v817_v9 = vpop.eup %816  ;;  %v330_v10 = vadd.f32 1.0, %v815_v8 }
 0x14b   :  { %v339_v11 = vmul.f32 %v817_v9, %v813_v7  ;;  %v819_v12 = vpop.eup %818  ;;  %v555_v9 = vld [vmem:[%s1075_s5] ss:$0 sm:$0xff]  ;;  %s940_s5 = smov [#allocation8]  }
 0x14c   :  { %828 = vrcp.f32 %v330_v10  ;;  %s537_s21 = sshll.u32 %s940_s5, 4  ;;  %s538_s21 = int_to_ptr.vmem [resolvable:$true] %s537_s21 }
 0x14d   :  { %667 = vmatprep.mubr.f32.mxu0 %v339_v11  ;;  %v556_v11 = vld [vmem:[%s1076_s6] ss:$0 sm:$0xff]  ;;  %s904_s6 = scalar_lea.vmem %s538_s21, 512  ;;  %p909_p11 = scmp.lt.s32.totalorder %s538_s21, %s538_s21 }
 0x14e   :  { %v821_v13 = vpop.eup %820  ;;  %p905_p10 = scmp.ne.s32.totalorder %s538_s21, %s904_s6  ;;  %p910_p12 = scmp.lt.s32.totalorder %s904_s6, %s904_s6 }
 0x14f   :  { %v340_v14 = vmul.f32 %v821_v13, %v819_v12  ;;  %v823_v15 = vpop.eup %822 }
 0x150   :  { %p911_p13 = por %p910_p12, %p909_p11 }
 0x151   :  { %668 = vmatmul.mubr.f32.vlgmr.msra.gmra.mrb[8].mxu0 %v340_v14 }
 0x152   :  { %v825_v16 = vpop.eup %824  ;;  %p912_p0 = pnand %p911_p13, %p905_p10 }
 0x153   :  { %v341_v0 = vmul.f32 %v825_v16, %v823_v15  ;;  %v827_v17 = vpop.eup %826 }
 0x155   :  { %670 = vmatprep.mubr.f32.mxu1 %v341_v0 }
 0x156   :  { %v829_v18 = vpop.eup %828 }
 0x157   :  { %v342_v19 = vmul.f32 %v829_v18, %v827_v17 }
 0x159   :  { %671 = vmatmul.mubr.f32.vlgmr.msra.gmra.mrb[2].mxu1 %v342_v19 }
 0x224   :  { %v669_v26 = vpop.f32.mrb[8].mxu0 }
 0x225   :  { %v786_v27 = vadd.f32 %v669_v26, %v298_v24  ;;  %v432_v28 = vpop.f32.mrb[9].mxu0 }
 0x226   :  { %v789_v30 = vadd.f32 %v432_v28, %v293_v25 }
 0x227   :  { %v787_v34 = vadd.f32 %v786_v27, %v554_v29 }
 0x228   :  { %v790_v31 = vadd.f32 %v789_v30, %v554_v29 }
 0x22a   :  { %455 = vadd.xlane.f32.xlu0 %v790_v31 }
 0x22c   :  { %v672_v33 = vpop.f32.mrb[2].mxu1 }
 0x22d   :  { %v442_v35 = vpop.f32.mrb[3].mxu1  ;;  %v792_v38 = vadd.f32 %v793_v32, %v672_v33 }
 0x22e   :  { %v794_v36 = vadd.f32 %v793_v32, %v442_v35  ;;  %457 = vadd.xlane.f32.xlu0 %v787_v34 }
 0x230   :  { %459 = vadd.xlane.f32.xlu1 %v794_v36 }
 0x234   :  { %461 = vadd.xlane.f32.xlu1 %v792_v38 }
 0x2b7   :  { %v456_v40 = vpop.xlane.xlu0 %455 }
 0x2b8   :  { %v463_v41 = vmul.f32 0.03125, %v456_v40 }
 0x2ba   :  { %v470_v42 = vsub.f32 %v790_v31, %v463_v41 }
 0x2bb   :  { %v458_v43 = vpop.xlane.xlu0 %457 }
 0x2bc   :  { %v464_v44 = vmul.f32 0.03125, %v458_v43  ;;  %v474_v45 = vsel %vm469_vm0, %v470_v42, 0.0 }
 0x2bd   :  { %v460_v46 = vpop.xlane.xlu1 %459  ;;  %v478_v47 = vmul.f32 %v474_v45, %v474_v45 }
 0x2be   :  { %v471_v48 = vsub.f32 %v787_v34, %v464_v44  ;;  %v465_v49 = vmul.f32 0.03125, %v460_v46 }
 0x2bf   :  { %482 = vadd.xlane.f32.xlu0 %v478_v47 }
 0x2c0   :  { %v472_v50 = vsub.f32 %v794_v36, %v465_v49  ;;  %v475_v51 = vsel %vm469_vm0, %v471_v48, 0.0 }
 0x2c1   :  { %v462_v52 = vpop.xlane.xlu1 %461  ;;  %v479_v53 = vmul.f32 %v475_v51, %v475_v51 }
 0x2c2   :  { %v466_v54 = vmul.f32 0.03125, %v462_v52  ;;  %v476_v37 = vsel %vm469_vm0, %v472_v50, 0.0 }
 0x2c3   :  { %484 = vadd.xlane.f32.xlu1 %v479_v53  ;;  %v480_v55 = vmul.f32 %v476_v37, %v476_v37 }
 0x2c4   :  { %v473_v56 = vsub.f32 %v792_v38, %v466_v54 }
 0x2c5   :  { %486 = vadd.xlane.f32.xlu0 %v480_v55 }
 0x2c6   :  { %v477_v57 = vsel %vm469_vm0, %v473_v56, 0.0 }
 0x2c7   :  { %v481_v58 = vmul.f32 %v477_v57, %v477_v57 }
 0x2c9   :  { %488 = vadd.xlane.f32.xlu1 %v481_v58 }
 0x34c   :  { %v483_v59 = vpop.xlane.xlu0 %482 }
 0x34d   :  { %v490_v60 = vmul.f32 0.03125, %v483_v59 }
 0x34f   :  { %v494_v61 = vadd.f32 1e-05, %v490_v60 }
 0x350   :  { %v485_v62 = vpop.xlane.xlu1 %484 }
 0x351   :  { %830 = vrsqrt.f32 %v494_v61  ;;  %v491_v63 = vmul.f32 0.03125, %v485_v62 }
 0x352   :  { %v487_v1 = vpop.xlane.xlu0 %486 }
 0x353   :  { %v495_v2 = vadd.f32 1e-05, %v491_v63  ;;  %v492_v3 = vmul.f32 0.03125, %v487_v1 }
 0x355   :  { %832 = vrsqrt.f32 %v495_v2  ;;  %v496_v4 = vadd.f32 1e-05, %v492_v3 }
 0x356   :  { %v489_v5 = vpop.xlane.xlu1 %488 }
 0x357   :  { %834 = vrsqrt.f32 %v496_v4  ;;  %v493_v6 = vmul.f32 0.03125, %v489_v5 }
 0x359   :  { %v497_v7 = vadd.f32 1e-05, %v493_v6 }
 0x35b   :  { %v831_v8 = vpop.eup %830  ;;  %836 = vrsqrt.f32 %v497_v7 }
 0x35c   :  { %v502_v10 = vmul.f32 %v831_v8, %v474_v45 }
 0x35e   :  { %v513_v12 = vmul.f32 %v555_v9, %v502_v10 }
 0x35f   :  { %v833_v13 = vpop.eup %832 }
 0x360   :  { %v503_v14 = vmul.f32 %v833_v13, %v475_v51  ;;  %v524_v15 = vadd.f32 %v556_v11, %v513_v12 }
 0x361   :  { %v835_v16 = vpop.eup %834 }
 0x362   :  { %v504_v0 = vmul.f32 %v835_v16, %v476_v37  ;;  %v514_v17 = vmul.f32 %v555_v9, %v503_v14  ;;  %528 = vst [vmem:[#allocation8] sm:$0xff] %v524_v15 }
 0x364   :  { %v515_v18 = vmul.f32 %v555_v9, %v504_v0  ;;  %v525_v19 = vadd.f32 %v556_v11, %v514_v17 }
 0x365   :  { %v837_v20 = vpop.eup %836 }
 0x366   :  { %v505_v21 = vmul.f32 %v837_v20, %v477_v57  ;;  %v526_v22 = vadd.f32 %v556_v11, %v515_v18  ;;  %529 = vst [vmem:[#allocation8 + $0x8] sm:$0xff] %v525_v19 }
 0x368   :  { %v516_v23 = vmul.f32 %v555_v9, %v505_v21  ;;  %530 = vst [vmem:[#allocation8 + $0x10] sm:$0xff] %v526_v22 }
 0x36a   :  { %v527_v24 = vadd.f32 %v556_v11, %v516_v23 }
 0x36c   :  { %531 = vst [vmem:[#allocation8 + $0x18] sm:$0xff] %v527_v24 }
 0x36d   :  { %915 = shalt.err (!%p912_p0)
}
 0x36e   :  { %s916_s24 = scalar_lea.hbm %s1077_s7, 512 }
 0x36f   :  { %p917_p1 = scmp.ne.s32.totalorder %s1077_s7, %s916_s24  ;;  %p920_p2 = scmp.lt.u32.totalorder %s916_s24, %s1077_s7 }
 0x371   :  { %p922_p3 = pnand %p920_p2, %p917_p1 }
 0x373   :  { %925 = shalt.err (!%p922_p3)
}
 0x374   :  { %543 = dma.vmem_to_hbm [thread:$0]  %s538_s21, 512, %s1077_s7, [#allocation4], %s936_s1, %s936_s1, %s937_s25  }
 0x375   :  { %930 = dma.done.wait [#allocation4], 512  }
 0x376   :  { %931 = vsyncadd [#allocation4], 4294966784 }
 0x377   :  { %547 = vsyncpa [#allocation3], 1 }
 0x378   :  { %548 = vsyncpa [#allocation6], 1 }
 0x379   :  { %549 = vsyncpa [#allocation4], 1 }

</bundles_post_ra>
